<compile_context>
chip_gen: v6e
topology: v6e:2x2x1
jax: 0.10.0
libtpu: 0.0.40
codegen_flags: <defaults>
</compile_context>

<pallas_src>
import math

import jax
import jax.numpy as jnp
from jax.experimental import pallas as pl
from jax.experimental.pallas import tpu as pltpu

MEL_MIN = -12.0
MEL_MAX = 2.0


def rf_forward_kernel(t_ref, flen_ref,                       # SMEM (B,) scalars
                      mel_ref, x0_ref, side_ref, cond_ref,   # per-batch VMEM blocks
                      w_in_ref, w_side_ref, w_out_ref, b_out_ref,  # shared weights
                      pred_ref, sse_ref):
    b = pl.program_id(0)
    t = t_ref[b]

    mel = mel_ref[0]                       # (S, M) f32
    x0 = x0_ref[0]                         # (S, M) f32

    # norm_mel + rectified-flow interpolation (elementwise, f32 on the VPU)
    x1 = (mel - MEL_MIN) / (MEL_MAX - MEL_MIN) * 2.0 - 1.0
    xt = (1.0 - t) * x0 + t * x1
    flow = x1 - x0

    # TODO(synk): real `transformer` module is external/undefined in rf.py; this is
    # a deterministic synthetic conditioned MLP with the same calling convention.
    # Input path fused: [cvec | f0 | rms] @ [w_c; w_f0; w_rms] is one bf16 matmul.
    h = jnp.dot(xt.astype(jnp.bfloat16), w_in_ref[...],
                preferred_element_type=jnp.float32)
    h = h + jnp.dot(side_ref[0], w_side_ref[...],
                    preferred_element_type=jnp.float32)
    h = h + cond_ref[0]                    # (1, D): spk emb (w/ drop_speaker) + time emb
    h = jax.nn.gelu(h, approximate=True)
    pred = jnp.dot(h.astype(jnp.bfloat16), w_out_ref[...],
                   preferred_element_type=jnp.float32) + b_out_ref[...]
    pred_ref[0] = pred                     # lane-dense (S, M) store

    # masked SSE partial: mask rebuilt from frame_len, reduce over S only
    S = mel.shape[0]
    row = jax.lax.broadcasted_iota(jnp.int32, (S, 1), 0)
    m = (row < flen_ref[b]).astype(jnp.float32)
    diff = pred - flow
    sse_ref[0] = jnp.sum(diff * diff * m, axis=0, keepdims=True)   # (1, M) partials


def rf_forward_pallas(time, frame_len, mel, x0, side_bf16, cond, kparams):
    B, S, M = mel.shape
    Ks = side_bf16.shape[-1]
    D = kparams["w_in"].shape[-1]

    flops = int(2 * B * S * D * (M + Ks) + 2 * B * S * D * M)
    transcendentals = int(B * S * D)                        # gelu tanh
    bytes_accessed = int(
        mel.size * 4 + x0.size * 4 + side_bf16.size * 2 + cond.size * 4
        + kparams["w_in"].size * 2 + kparams["w_side"].size * 2
        + kparams["w_out"].size * 2 + kparams["b_out"].size * 4
        + B * S * M * 4 + B * M * 4)

    def per_b(shape):
        return pl.BlockSpec(shape, lambda b: (0,) * (len(shape) - 1) and (b, 0, 0))

    pred, sse = pl.pallas_call(
        rf_forward_kernel,
        grid=(B,),
        in_specs=[
            pl.BlockSpec(memory_space=pltpu.MemorySpace.SMEM),   # time (B,) f32
            pl.BlockSpec(memory_space=pltpu.MemorySpace.SMEM),   # frame_len (B,) i32
            pl.BlockSpec((1, S, M), lambda b: (b, 0, 0)),        # mel
            pl.BlockSpec((1, S, M), lambda b: (b, 0, 0)),        # x0
            pl.BlockSpec((1, S, Ks), lambda b: (b, 0, 0)),       # side = [cvec|f0|rms] bf16
            pl.BlockSpec((1, 1, D), lambda b: (b, 0, 0)),        # cond = spk + time emb
            pl.BlockSpec((M, D), lambda b: (0, 0)),              # w_in  bf16
            pl.BlockSpec((Ks, D), lambda b: (0, 0)),             # w_side bf16
            pl.BlockSpec((D, M), lambda b: (0, 0)),              # w_out bf16
            pl.BlockSpec((1, M), lambda b: (0, 0)),              # b_out f32
        ],
        out_specs=[
            pl.BlockSpec((1, S, M), lambda b: (b, 0, 0)),        # pred
            pl.BlockSpec((1, 1, M), lambda b: (b, 0, 0)),        # per-batch SSE partials
        ],
        out_shape=[
            jax.ShapeDtypeStruct((B, S, M), jnp.float32),
            jax.ShapeDtypeStruct((B, 1, M), jnp.float32),
        ],
        compiler_params=pltpu.CompilerParams(
            dimension_semantics=("parallel",),        # batch axis independent (v7x 2 TC)
            vmem_limit_bytes=48 * 1024 * 1024),       # headroom for production S tiles
        cost_estimate=pl.CostEstimate(flops=flops,
                                      transcendentals=transcendentals,
                                      bytes_accessed=bytes_accessed),
    )(time, frame_len, mel, x0, side_bf16, cond,
      kparams["w_in"], kparams["w_side"], kparams["w_out"], kparams["b_out"])

    # loss.mean() over boolean-indexed frames == sum(masked sq) / (n_masked_frames * M)
    n_frames = jnp.sum(jnp.minimum(frame_len, S)).astype(jnp.float32)
    loss = jnp.sum(sse) / (n_frames * M)
    return loss, pred


if __name__ == "__main__":
    B, S, M, C, D = 2, 16, 128, 128, 256
    NUM_SPK = 4

    key = jax.random.PRNGKey(0)
    keys = jax.random.split(key, 16)

    # inputs implied by RF.forward
    mel = jax.random.uniform(keys[0], (B, S, M), minval=-12.0, maxval=2.0)
    spk_id = jnp.array([1, 3], dtype=jnp.int32)
    f0 = jax.random.uniform(keys[1], (B, S), minval=0.0, maxval=1.0)
    rms = jax.random.uniform(keys[2], (B, S), minval=0.0, maxval=1.0)
    cvec = jax.random.normal(keys[3], (B, S, C), dtype=jnp.float32)
    frame_len = jnp.array([S, S - 5], dtype=jnp.int32)
    drop_speaker = jnp.array([False, False])

    # deterministic synthetic-transformer parameters (f32 masters)
    def init(k, shape, scale):
        return (scale * jax.random.normal(k, shape)).astype(jnp.float32)

    params = dict(
        w_in=init(keys[4], (M, D), 1.0 / math.sqrt(M)),
        w_c=init(keys[5], (C, D), 1.0 / math.sqrt(C)),
        w_f0=init(keys[6], (1, D), 0.1),
        w_rms=init(keys[7], (1, D), 0.1),
        w_out=init(keys[8], (D, M), 1.0 / math.sqrt(D)),
        b_out=jnp.zeros((1, M), jnp.float32),
        spk_emb=init(keys[9], (NUM_SPK, D), 0.1),
        w_time=init(keys[10], (2, D), 0.5),
    )

    # ---- host-side JAX glue ----
    # sample_time('lognorm', B): linspace quantiles + uniform, erfinv, sigmoid
    quantiles = jnp.linspace(0.0, 1.0, B + 1)
    u = jax.random.uniform(keys[11], (B,))
    z = quantiles[:-1] + u / B
    z = jax.scipy.special.erfinv(2.0 * z - 1.0) * math.sqrt(2.0)
    time = jax.nn.sigmoid(z).astype(jnp.float32)

    # x0 = randn_like(x1)
    x0 = jax.random.normal(keys[12], (B, S, M), dtype=jnp.float32)

    # conditioning vector: speaker embedding (with drop_speaker) + time embedding
    keep = 1.0 - drop_speaker.astype(jnp.float32)
    time_feat = jnp.stack([jnp.sin(2 * math.pi * time), jnp.cos(2 * math.pi * time)], axis=-1)
    cond = (params["spk_emb"][spk_id] * keep[:, None] + time_feat @ params["w_time"])[:, None, :]

    # pack the conditioning-path inputs/weights for the fused matmul (bf16 operands)
    side = jnp.concatenate([cvec, f0[..., None], rms[..., None]], axis=-1)      # (B,S,C+2)
    kparams = dict(
        w_in=params["w_in"].astype(jnp.bfloat16),
        w_side=jnp.concatenate([params["w_c"], params["w_f0"], params["w_rms"]],
                               axis=0).astype(jnp.bfloat16),                    # (C+2,D)
        w_out=params["w_out"].astype(jnp.bfloat16),
        b_out=params["b_out"],
    )

    loss, pred = rf_forward_pallas(time, frame_len, mel, x0,
                                   side.astype(jnp.bfloat16), cond, kparams)
    jax.block_until_ready((loss, pred))

    # pure-JAX f32 reference of the same pipeline (sanity check)
    mask = jnp.arange(S)[None, :] < frame_len[:, None]
    mask_f = mask.astype(jnp.float32)[..., None]
    x1 = (mel - MEL_MIN) / (MEL_MAX - MEL_MIN) * 2.0 - 1.0
    t3 = time[:, None, None]
    xt = (1.0 - t3) * x0 + t3 * x1
    flow = x1 - x0
    h = (xt @ params["w_in"] + cvec @ params["w_c"]
         + f0[..., None] * params["w_f0"][None]
         + rms[..., None] * params["w_rms"][None] + cond)
    h = jax.nn.gelu(h, approximate=True)
    pred_ref = h @ params["w_out"] + params["b_out"][None]
    loss_ref = jnp.sum((pred_ref - flow) ** 2 * mask_f) / (jnp.sum(mask_f) * M)

    assert pred.shape == (B, S, M)
    assert bool(jnp.isfinite(loss))
    assert jnp.allclose(pred, pred_ref, rtol=5e-2, atol=5e-2)
    assert jnp.allclose(loss, loss_ref, rtol=5e-2, atol=5e-2)
    print("KERNEL_OK")
</pallas_src>

<mosaic_0001>
module attributes {stable_mosaic.version = 11 : i64} {
  func.func @rf_forward_kernel(%arg0: i32, %arg1: memref<2xf32, #tpu.memory_space<smem>>, %arg2: memref<2xi32, #tpu.memory_space<smem>>, %arg3: memref<1x16x128xf32, #tpu.memory_space<vmem>>, %arg4: memref<1x16x128xf32, #tpu.memory_space<vmem>>, %arg5: memref<1x16x130xbf16, #tpu.memory_space<vmem>>, %arg6: memref<1x1x256xf32, #tpu.memory_space<vmem>>, %arg7: memref<128x256xbf16, #tpu.memory_space<vmem>>, %arg8: memref<130x256xbf16, #tpu.memory_space<vmem>>, %arg9: memref<256x128xbf16, #tpu.memory_space<vmem>>, %arg10: memref<1x128xf32, #tpu.memory_space<vmem>>, %arg11: memref<1x16x128xf32, #tpu.memory_space<vmem>>, %arg12: memref<1x1x128xf32, #tpu.memory_space<vmem>>) attributes {dimension_semantics = [#tpu.dimension_semantics<parallel>], iteration_bounds = array<i64: 2>, scalar_prefetch = 0 : i64, scratch_operands = 0 : i64, tpu.core_type = #tpu.core_type<tc>, window_params = [{transform_indices = @transform_0, window_bounds = array<i64: 2>}, {transform_indices = @transform_1, window_bounds = array<i64: 2>}, {transform_indices = @transform_2, window_bounds = array<i64: 1, 16, 128>}, {transform_indices = @transform_3, window_bounds = array<i64: 1, 16, 128>}, {transform_indices = @transform_4, window_bounds = array<i64: 1, 16, 130>}, {transform_indices = @transform_5, window_bounds = array<i64: 1, 1, 256>}, {pipeline_mode = #tpu.pipeline_mode<synchronous>, transform_indices = @transform_6, window_bounds = array<i64: 128, 256>}, {pipeline_mode = #tpu.pipeline_mode<synchronous>, transform_indices = @transform_7, window_bounds = array<i64: 130, 256>}, {pipeline_mode = #tpu.pipeline_mode<synchronous>, transform_indices = @transform_8, window_bounds = array<i64: 256, 128>}, {pipeline_mode = #tpu.pipeline_mode<synchronous>, transform_indices = @transform_9, window_bounds = array<i64: 1, 128>}, {transform_indices = @transform_10, window_bounds = array<i64: 1, 16, 128>}, {transform_indices = @transform_11, window_bounds = array<i64: 1, 1, 128>}]} {
    %0 = arith.index_cast %arg0 : i32 to index
    %1 = memref.load %arg1[%0] : memref<2xf32, #tpu.memory_space<smem>>
    %c0 = arith.constant 0 : index
    %c0_0 = arith.constant 0 : index
    %c0_1 = arith.constant 0 : index
    %2 = vector.load %arg3[%c0, %c0_0, %c0_1] : memref<1x16x128xf32, #tpu.memory_space<vmem>>, vector<1x16x128xf32>
    %3 = vector.shape_cast %2 : vector<1x16x128xf32> to vector<16x128xf32>
    %c0_2 = arith.constant 0 : index
    %c0_3 = arith.constant 0 : index
    %c0_4 = arith.constant 0 : index
    %4 = vector.load %arg4[%c0_2, %c0_3, %c0_4] : memref<1x16x128xf32, #tpu.memory_space<vmem>>, vector<1x16x128xf32>
    %5 = vector.shape_cast %4 : vector<1x16x128xf32> to vector<16x128xf32>
    %cst = arith.constant -1.200000e+01 : f32
    %6 = vector.broadcast %cst : f32 to vector<16x128xf32>
    %7 = arith.subf %3, %6 : vector<16x128xf32>
    %cst_5 = arith.constant 1.400000e+01 : f32
    %8 = vector.broadcast %cst_5 : f32 to vector<16x128xf32>
    %9 = arith.divf %7, %8 : vector<16x128xf32>
    %cst_6 = arith.constant 2.000000e+00 : f32
    %10 = vector.broadcast %cst_6 : f32 to vector<16x128xf32>
    %11 = arith.mulf %9, %10 : vector<16x128xf32>
    %cst_7 = arith.constant 1.000000e+00 : f32
    %12 = vector.broadcast %cst_7 : f32 to vector<16x128xf32>
    %13 = arith.subf %11, %12 : vector<16x128xf32>
    %cst_8 = arith.constant 1.000000e+00 : f32
    %14 = arith.subf %cst_8, %1 : f32
    %15 = vector.broadcast %14 : f32 to vector<16x128xf32>
    %16 = arith.mulf %15, %5 : vector<16x128xf32>
    %17 = vector.broadcast %1 : f32 to vector<16x128xf32>
    %18 = arith.mulf %17, %13 : vector<16x128xf32>
    %19 = arith.addf %16, %18 : vector<16x128xf32>
    %20 = arith.subf %13, %5 : vector<16x128xf32>
    %21 = arith.truncf %19 : vector<16x128xf32> to vector<16x128xbf16>
    %c0_9 = arith.constant 0 : index
    %c0_10 = arith.constant 0 : index
    %22 = vector.load %arg7[%c0_9, %c0_10] : memref<128x256xbf16, #tpu.memory_space<vmem>>, vector<128x256xbf16>
    %cst_11 = arith.constant dense<0.000000e+00> : vector<16x256xf32>
    %23 = tpu.matmul %21, %22, %cst_11 {dimension_numbers = #tpu.dot_dimension_numbers<[1], [0], [0], [1], [0, 0, 1, 1], [], []>} : vector<16x128xbf16>, vector<128x256xbf16>, vector<16x256xf32> -> vector<16x256xf32>
    %c0_12 = arith.constant 0 : index
    %c0_13 = arith.constant 0 : index
    %c0_14 = arith.constant 0 : index
    %24 = vector.load %arg5[%c0_12, %c0_13, %c0_14] : memref<1x16x130xbf16, #tpu.memory_space<vmem>>, vector<1x16x130xbf16>
    %25 = vector.shape_cast %24 : vector<1x16x130xbf16> to vector<16x130xbf16>
    %c0_15 = arith.constant 0 : index
    %c0_16 = arith.constant 0 : index
    %26 = vector.load %arg8[%c0_15, %c0_16] : memref<130x256xbf16, #tpu.memory_space<vmem>>, vector<130x256xbf16>
    %cst_17 = arith.constant dense<0.000000e+00> : vector<16x256xf32>
    %27 = tpu.matmul %25, %26, %cst_17 {dimension_numbers = #tpu.dot_dimension_numbers<[1], [0], [0], [1], [0, 0, 1, 1], [], []>} : vector<16x130xbf16>, vector<130x256xbf16>, vector<16x256xf32> -> vector<16x256xf32>
    %28 = arith.addf %23, %27 : vector<16x256xf32>
    %c0_18 = arith.constant 0 : index
    %c0_19 = arith.constant 0 : index
    %c0_20 = arith.constant 0 : index
    %29 = vector.load %arg6[%c0_18, %c0_19, %c0_20] : memref<1x1x256xf32, #tpu.memory_space<vmem>>, vector<1x1x256xf32>
    %30 = vector.shape_cast %29 : vector<1x1x256xf32> to vector<1x256xf32>
    %31 = vector.broadcast %30 : vector<1x256xf32> to vector<16x256xf32>
    %32 = arith.addf %28, %31 : vector<16x256xf32>
    %33 = arith.mulf %32, %32 : vector<16x256xf32>
    %34 = arith.mulf %32, %33 : vector<16x256xf32>
    %cst_21 = arith.constant 4.471500e-02 : f32
    %35 = vector.broadcast %cst_21 : f32 to vector<16x256xf32>
    %36 = arith.mulf %35, %34 : vector<16x256xf32>
    %37 = arith.addf %32, %36 : vector<16x256xf32>
    %cst_22 = arith.constant 0.797884583 : f32
    %38 = vector.broadcast %cst_22 : f32 to vector<16x256xf32>
    %39 = arith.mulf %38, %37 : vector<16x256xf32>
    %40 = math.tanh %39 : vector<16x256xf32>
    %cst_23 = arith.constant 1.000000e+00 : f32
    %41 = vector.broadcast %cst_23 : f32 to vector<16x256xf32>
    %42 = arith.addf %41, %40 : vector<16x256xf32>
    %cst_24 = arith.constant 5.000000e-01 : f32
    %43 = vector.broadcast %cst_24 : f32 to vector<16x256xf32>
    %44 = arith.mulf %43, %42 : vector<16x256xf32>
    %45 = arith.mulf %32, %44 : vector<16x256xf32>
    %46 = arith.truncf %45 : vector<16x256xf32> to vector<16x256xbf16>
    %c0_25 = arith.constant 0 : index
    %c0_26 = arith.constant 0 : index
    %47 = vector.load %arg9[%c0_25, %c0_26] : memref<256x128xbf16, #tpu.memory_space<vmem>>, vector<256x128xbf16>
    %cst_27 = arith.constant dense<0.000000e+00> : vector<16x128xf32>
    %48 = tpu.matmul %46, %47, %cst_27 {dimension_numbers = #tpu.dot_dimension_numbers<[1], [0], [0], [1], [0, 0, 1, 1], [], []>} : vector<16x256xbf16>, vector<256x128xbf16>, vector<16x128xf32> -> vector<16x128xf32>
    %c0_28 = arith.constant 0 : index
    %c0_29 = arith.constant 0 : index
    %49 = vector.load %arg10[%c0_28, %c0_29] : memref<1x128xf32, #tpu.memory_space<vmem>>, vector<1x128xf32>
    %50 = vector.broadcast %49 : vector<1x128xf32> to vector<16x128xf32>
    %51 = arith.addf %48, %50 : vector<16x128xf32>
    %c0_30 = arith.constant 0 : index
    %c0_31 = arith.constant 0 : index
    %c0_32 = arith.constant 0 : index
    %52 = vector.load %arg11[%c0_30, %c0_31, %c0_32] : memref<1x16x128xf32, #tpu.memory_space<vmem>>, vector<1x16x128xf32>
    %53 = vector.shape_cast %52 : vector<1x16x128xf32> to vector<16x128xf32>
    %54 = vector.shape_cast %51 : vector<16x128xf32> to vector<1x16x128xf32>
    tpu.vector_store %arg11[%c0_30, %c0_31, %c0_32], %54 {strides = array<i32>} : memref<1x16x128xf32, #tpu.memory_space<vmem>>, vector<1x16x128xf32>,
    %55 = tpu.iota {dimensions = array<i32: 0>} : vector<16x1xi32>
    %56 = arith.index_cast %arg0 : i32 to index
    %57 = memref.load %arg2[%56] : memref<2xi32, #tpu.memory_space<smem>>
    %58 = vector.broadcast %57 : i32 to vector<16x1xi32>
    %59 = arith.cmpi slt, %55, %58 : vector<16x1xi32>
    %60 = arith.extui %59 : vector<16x1xi1> to vector<16x1xi32>
    %61 = arith.sitofp %60 : vector<16x1xi32> to vector<16x1xf32>
    %62 = arith.subf %51, %20 : vector<16x128xf32>
    %63 = arith.mulf %62, %62 : vector<16x128xf32>
    %64 = vector.broadcast %61 : vector<16x1xf32> to vector<16x128xf32>
    %65 = arith.mulf %63, %64 : vector<16x128xf32>
    %cst_33 = arith.constant dense<0.000000e+00> : vector<128xf32>
    %66 = vector.multi_reduction <add>, %65, %cst_33 [0] : vector<16x128xf32> to vector<128xf32>
    %67 = vector.shape_cast %66 : vector<128xf32> to vector<1x128xf32>
    %c0_34 = arith.constant 0 : index
    %c0_35 = arith.constant 0 : index
    %c0_36 = arith.constant 0 : index
    %68 = vector.load %arg12[%c0_34, %c0_35, %c0_36] : memref<1x1x128xf32, #tpu.memory_space<vmem>>, vector<1x1x128xf32>
    %69 = vector.shape_cast %68 : vector<1x1x128xf32> to vector<1x128xf32>
    %70 = vector.shape_cast %67 : vector<1x128xf32> to vector<1x1x128xf32>
    tpu.vector_store %arg12[%c0_34, %c0_35, %c0_36], %70 {strides = array<i32>} : memref<1x1x128xf32, #tpu.memory_space<vmem>>, vector<1x1x128xf32>,
    return
  }
  func.func @transform_0(%arg0: i32) -> i32 {
    %c0_i32 = arith.constant 0 : i32
    %c0_i32_0 = arith.constant 0 : i32
    return %c0_i32 : i32
  }
  func.func @transform_1(%arg0: i32) -> i32 {
    %c0_i32 = arith.constant 0 : i32
    %c0_i32_0 = arith.constant 0 : i32
    return %c0_i32 : i32
  }
  func.func @transform_2(%arg0: i32) -> (i32, i32, i32) {
    %c0_i32 = arith.constant 0 : i32
    %c0_i32_0 = arith.constant 0 : i32
    %c0_i32_1 = arith.constant 0 : i32
    return %arg0, %c0_i32, %c0_i32_0 : i32, i32, i32
  }
  func.func @transform_3(%arg0: i32) -> (i32, i32, i32) {
    %c0_i32 = arith.constant 0 : i32
    %c0_i32_0 = arith.constant 0 : i32
    %c0_i32_1 = arith.constant 0 : i32
    return %arg0, %c0_i32, %c0_i32_0 : i32, i32, i32
  }
  func.func @transform_4(%arg0: i32) -> (i32, i32, i32) {
    %c0_i32 = arith.constant 0 : i32
    %c0_i32_0 = arith.constant 0 : i32
    %c0_i32_1 = arith.constant 0 : i32
    return %arg0, %c0_i32, %c0_i32_0 : i32, i32, i32
  }
  func.func @transform_5(%arg0: i32) -> (i32, i32, i32) {
    %c0_i32 = arith.constant 0 : i32
    %c0_i32_0 = arith.constant 0 : i32
    %c0_i32_1 = arith.constant 0 : i32
    return %arg0, %c0_i32, %c0_i32_0 : i32, i32, i32
  }
  func.func @transform_6(%arg0: i32) -> (i32, i32) {
    %c0_i32 = arith.constant 0 : i32
    %c0_i32_0 = arith.constant 0 : i32
    %c0_i32_1 = arith.constant 0 : i32
    return %c0_i32, %c0_i32_0 : i32, i32
  }
  func.func @transform_7(%arg0: i32) -> (i32, i32) {
    %c0_i32 = arith.constant 0 : i32
    %c0_i32_0 = arith.constant 0 : i32
    %c0_i32_1 = arith.constant 0 : i32
    return %c0_i32, %c0_i32_0 : i32, i32
  }
  func.func @transform_8(%arg0: i32) -> (i32, i32) {
    %c0_i32 = arith.constant 0 : i32
    %c0_i32_0 = arith.constant 0 : i32
    %c0_i32_1 = arith.constant 0 : i32
    return %c0_i32, %c0_i32_0 : i32, i32
  }
  func.func @transform_9(%arg0: i32) -> (i32, i32) {
    %c0_i32 = arith.constant 0 : i32
    %c0_i32_0 = arith.constant 0 : i32
    %c0_i32_1 = arith.constant 0 : i32
    return %c0_i32, %c0_i32_0 : i32, i32
  }
  func.func @transform_10(%arg0: i32) -> (i32, i32, i32) {
    %c0_i32 = arith.constant 0 : i32
    %c0_i32_0 = arith.constant 0 : i32
    %c0_i32_1 = arith.constant 0 : i32
    return %arg0, %c0_i32, %c0_i32_0 : i32, i32, i32
  }
  func.func @transform_11(%arg0: i32) -> (i32, i32, i32) {
    %c0_i32 = arith.constant 0 : i32
    %c0_i32_0 = arith.constant 0 : i32
    %c0_i32_1 = arith.constant 0 : i32
    return %arg0, %c0_i32, %c0_i32_0 : i32, i32, i32
  }
}

</mosaic_0001>

<bundles_post_ra>
// kernel: tpu_custom_call.1
= control target key start
LH: loop header
LB: loop body
LE: loop exit
PB: predicated region body
PF: predicated region fallthrough
CT: control target
= control target key end

     0   :  { %s2496_s0 = inlined_call_operand.hbm [shape: f32[2], index: 0, kind: input, shape index: {}]   ;;  %s2497_s1 = inlined_call_operand.vmem [shape: s32[2], index: 1, kind: input, shape index: {}]   ;;  %s2498_s2 = inlined_call_operand.hbm [shape: f32[2,16,128], index: 2, kind: input, shape index: {}]   ;;  %s2499_s3 = inlined_call_operand.hbm [shape: f32[2,16,128], index: 3, kind: input, shape index: {}]   ;;  %s2500_s4 = inlined_call_operand.hbm [shape: bf16[2,16,130], index: 4, kind: input, shape index: {}]   ;;  %s2501_s5 = inlined_call_operand.vmem [shape: f32[2,1,256], index: 5, kind: input, shape index: {}]   ;;  %s2502_s6 = inlined_call_operand.hbm [shape: bf16[128,256], index: 6, kind: input, shape index: {}]   ;;  %s2503_s7 = inlined_call_operand.hbm [shape: bf16[130,256], index: 7, kind: input, shape index: {}]   ;;  %s2504_s8 = inlined_call_operand.hbm [shape: bf16[256,128], index: 8, kind: input, shape index: {}]   ;;  %s2505_s9 = inlined_call_operand.vmem [shape: f32[1,128], index: 9, kind: input, shape index: {}]   ;;  %s2506_s10 = inlined_call_operand.hbm [shape: f32[2,16,128], index: 10, kind: output, shape index: {0}]   ;;  %s2507_s11 = inlined_call_operand.hbm [shape: f32[2,1,128], index: 11, kind: output, shape index: {1}]  }
   0x1   :  { %2529 = sst [smem:[#allocation34_spill]] %s2496_s0 }
   0x2   :  { %2530 = sst [smem:[#allocation35_spill]] %s2497_s1 }
   0x3   :  { %2531 = sst [smem:[#allocation36_spill]] %s2499_s3 }
   0x4   :  { %2532 = sst [smem:[#allocation37_spill]] %s2502_s6 }
   0x5   :  { %2533 = sst [smem:[#allocation38_spill]] %s2503_s7 }
   0x6   :  { %2534 = sst [smem:[#allocation39_spill]] %s2506_s10 }
   0x7   :  { %2535 = sst [smem:[#allocation40_spill]] %s2507_s11 }
   0x8   :  { %17 = vsyncpa [#allocation5], 0 }
   0x9   :  { %18 = vsyncpa [#allocation6], 0 }
   0xa   :  { %19 = vsyncpa [#allocation3], 0 }
   0xb   :  { %21 = vsyncpa [#allocation3 + $0x1], 0 }
   0xc   :  { %22 = vsyncpa [#allocation10], 0 }
   0xd   :  { %24 = vsyncpa [#allocation10 + $0x1], 0 }
   0xe   :  { %25 = vsyncpa [#allocation13], 0 }
   0xf   :  { %26 = vsyncpa [#allocation16], 0 }
  0x10   :  { %27 = vsyncpa [#allocation4], 0 }
  0x11   :  { %29 = vsyncpa [#allocation4 + $0x1], 0 }
  0x12   :  { %30 = vsyncpa [#allocation19], 0 }
  0x13   :  { %32 = vsyncpa [#allocation19 + $0x1], 0  ;;  %s2108_s17 = smov 0   ;;  %s2110_s18 = smov 0  }
  0x14   :  { %s2112_s19 = smov 0   ;;  %s2114_s20 = smov 0  }
  0x15 LB: > { %2536 = sst [smem:[#allocation28_spill]] %s2016_s17  ;;  %s2030_s21 = smov [#allocation12]   ;;  %s2028_s20 = sphi %s2114_s20, %s2581_s20   ;;  %s2024_s19 = sphi %s2112_s19, %s2585_s19   ;;  %s2020_s18 = sphi %s2110_s18, %s2584_s18   ;;  %s2016_s17 = sphi %s2108_s17, %s2583_s17  }
  0x16   : > { %2537 = sst [smem:[#allocation29_spill]] %s2028_s20  ;;  %s357_s22 = sshll.u32 %s2030_s21, 4  ;;  %s358_s22 = int_to_ptr.vmem [resolvable:$true] %s357_s22 }
  0x17   : > { %s2129_s23 = sadd.s32 4294967295, %s2028_s20   ;;  %p1409_p0 = scmp.ge.s32.totalorder %s2028_s20, 1 }
  0x18   : > { %p2520_p1 = scmp.eq.s32.totalorder %s2129_s23, 0  ;;  %p286_p2 = scmp.eq.s32.totalorder %s2129_s23, 1 }
  0x19   : > { %p325_p3 = scmp.lt.s32.totalorder %s2028_s20, 3  ;;  %s1408_s26 = sadd.s32 4294967294, %s2028_s20  }
  0x1a   : > { %s2150_s27 = sadd.s32 1, %s2028_s20   ;;  %s1737_s28 = scalar_lea.vmem %s358_s22, 2048 }
  0x1b   : > { %p2135_p4 = pnand %p1409_p0, %p325_p3  ;;  %2540 = sst [smem:[#allocation30_spill]] %s2150_s27 }
  0x1c   : > { %p1738_p9 = scmp.ne.s32.totalorder %s358_s22, %s1737_s28  ;;  %p1745_p12 = scmp.lt.s32.totalorder %s358_s22, %s358_s22 }
  0x1d   : > { %s2538_s24 = scalar_select %p2135_p4, 1, 0 }
  0x1e   : > { %p1559_p6 = pneg %p2135_p4  ;;  %p1746_p13 = scmp.lt.s32.totalorder %s1737_s28, %s1737_s28 }
  0x20   : > { %p2144_p7 = pnand %p1559_p6, %p2520_p1  ;;  %p1747_p0 = por %p1746_p13, %p1745_p12 }
  0x22   : > { %s2539_s25 = scalar_select %p2144_p7, 1, 0 }
  0x23   : > { %p2508_p8 = pneg %p2144_p7 }
  0x25   : > { %p1740_p10 = pnand %p1738_p9, %p2508_p8 }
  0x27   : > { %p1741_p11 = pneg %p1740_p10 }
  0x29   : > { %p1748_p3 = pnand %p1747_p0, %p1741_p11 }
  0x2b   : > { %1751 = shalt.err (!%p1748_p3)
}
  0x2c   : > { %s2509_s29 = smov 128   ;;  %s2511_s30 = smov 8  }
  0x2d   : > { %s2541_s6 = sld [smem:[#allocation37_spill]]  ;;  %s84_s14 = ssub.s32 %s2028_s20, %s2150_s27 }
  0x2e   : > { %s87_s15 = sadd.s32 1, %s2024_s19  ;;  %p85_p6 = scmp.eq.s32.totalorder %s84_s14, 0 }
  0x2f   : > { %p94_p9 = scmp.ne.s32.totalorder %s2024_s19, %s2020_s18  ;;  %p95_p10 = scmp.eq.s32.totalorder %s2028_s20, 0 }
  0x30   : > { %p100_p11 = scmp.ne.s32.totalorder %s2020_s18, %s2016_s17  ;;  %p292_p3 = scmp.eq.s32.totalorder %s1408_s26, 1 }
  0x31   : > { %s2174_s16 = scalar_select %p85_p6, %s2024_s19, %s87_s15  }
  0x32   : > { %p96_p12 = por %p95_p10, %p94_p9  ;;  %p2178_p13 = por %p2520_p1, %p100_p11 }
  0x33   : > { %1568 = dma.hbm_to_vmem [thread:$0]  (!%p2144_p7), %s2541_s6, 2048, %s358_s22, [#allocation13], %s2509_s29, %s2509_s29, %s2511_s30  }
  0x34   : > { %2542 = sst [smem:[#allocation31_spill]] %s2174_s16  ;;  %p2184_p0 = por %p286_p2, %p94_p9 }
  0x35   : > { %s2543_s21 = scalar_select %p2178_p13, 1, 0 }
  0x36   : > { %s2544_s28 = scalar_select %p2184_p0, 1, 0 }
  0x37   : > { %p1597_p5 = scmp.lt.s32.totalorder %s2028_s20, 2  ;;  %s2513_s22 = sand.u32 1, %s2024_s19  }
  0x38   : > { %2545 = sst [smem:[#allocation32_spill]] %s2544_s28  ;;  %p2190_p8 = por %p292_p3, %p100_p11 }
  0x39   : > { %s2196_s13 = sshll.u32 %s2513_s22, 4  ;;  %s2199_s14 = sshll.u32 %s2028_s20, 8 }
  0x3a   : > { %s2546_s12 = scalar_select %p2190_p8, 1, 0 }
  0x3b   : > { %p2201_p6 = pnand %p1597_p5, %p96_p12  ;;  %s421_s29 = sand.u32 1, %s2028_s20  }
  0x3c   : > { %2547 = sst [smem:[#allocation33_spill]] %s2546_s12  ;;  %s425_s22 = scalar_lea.vmem [#allocation9], %s2196_s13 }
  0x3d   : > { %s2549_s3 = sld [smem:[#allocation36_spill]]  ;;  %s432_s16 = sshll.u32 %s425_s22, 4  ;;  %s2213_s16 = int_to_ptr.vmem [resolvable:$true] %s432_s16 }
  0x3e   : > { %s2215_s27 = scalar_lea.sflag [#allocation10], %s421_s29  ;;  %p2221_p5 = pneg %p2201_p6 }
  0x43   : > { %s2210_s6 = scalar_lea.hbm %s2549_s3, %s2199_s14  ;;  %s1757_s20 = scalar_lea.hbm %s2549_s3, 512 }
  0x44   : > { %s1752_s12 = scalar_lea.hbm %s2210_s6, 256  ;;  %p1758_p11 = scmp.lt.s32.totalorder %s2210_s6, %s2549_s3 }
  0x45   : > { %p1753_p2 = scmp.ne.s32.totalorder %s2210_s6, %s1752_s12  ;;  %p1759_p12 = scmp.lt.s32.totalorder %s1757_s20, %s1752_s12 }
  0x47   : > { %p1755_p9 = pnand %p2221_p5, %p1753_p2  ;;  %p1760_p3 = por %p1759_p12, %p1758_p11 }
  0x49   : > { %p1756_p10 = pneg %p1755_p9 }
  0x4b   : > { %p1761_p1 = pnand %p1760_p3, %p1756_p10 }
  0x4d   : > { %1764 = shalt.err (!%p1761_p1)
}
  0x4e   : > { %s1765_s29 = scalar_lea.vmem %s2213_s16, 256  ;;  %s2033_s10 = smov [#allocation9]  }
  0x4f   : > { %p1766_p8 = scmp.ne.s32.totalorder %s2213_s16, %s1765_s29  ;;  %s1770_s30 = sshll.u32 %s2033_s10, 4  ;;  %s1771_s30 = int_to_ptr.vmem [resolvable:$false] %s1770_s30 }
  0x50   : > { %s1772_s26 = scalar_lea.vmem %s1771_s30, 512  ;;  %p1773_p0 = scmp.lt.s32.totalorder %s2213_s16, %s1771_s30 }
  0x51   : > { %p1768_p2 = pnand %p1766_p8, %p2221_p5  ;;  %p1774_p13 = scmp.lt.s32.totalorder %s1772_s26, %s1765_s29 }
  0x53   : > { %p1769_p9 = pneg %p1768_p2  ;;  %p1775_p4 = por %p1774_p13, %p1773_p0 }
  0x55   : > { %p1776_p7 = pnand %p1775_p4, %p1769_p9 }
  0x57   : > { %1779 = shalt.err (!%p1776_p7)
}
  0x58   : > { %s2551_s11 = smov 8   ;;  %s2552_s20 = smov 128  }
  0x59   : > { %1581 = dma.hbm_to_vmem [thread:$0]  (!%p2201_p6), %s2210_s6, 256, %s2213_s16, %s2215_s27, %s2552_s20, %s2552_s20, %s2551_s11  }
  0x5a   : > { %s2034_s12 = smov [#allocation2]   ;;  %p2553_p1 = scmp.ne.s32.totalorder %s2539_s25, 0 }
  0x5b   : > { %s2554_s0 = sld [smem:[#allocation34_spill]] }
  0x5c   : > { %s2555_s1 = sld [smem:[#allocation35_spill]]  ;;  %p2556_p7 = pneg %p2553_p1 }
  0x61   : > { %1562 = dma.hbm_to_smem (!%p2553_p1), %s2554_s0, 16, %s2034_s12, [#allocation5]  }
  0x62   : > { %s347_s26 = sshll.u32 %s2555_s1, 4  ;;  %s348_s26 = int_to_ptr.vmem [resolvable:$true] %s347_s26 }
  0x63   : > { %s1791_s3 = scalar_lea.vmem %s348_s26, 16  ;;  %p1799_p0 = scmp.lt.s32.totalorder %s348_s26, %s348_s26 }
  0x64   : > { %p1792_p4 = scmp.ne.s32.totalorder %s348_s26, %s1791_s3  ;;  %p1800_p10 = scmp.lt.s32.totalorder %s1791_s3, %s1791_s3 }
  0x66   : > { %p1794_p8 = pnand %p1792_p4, %p2556_p7  ;;  %p1801_p11 = por %p1800_p10, %p1799_p0 }
  0x68   : > { %p1795_p13 = pneg %p1794_p8 }
  0x6a   : > { %p1802_p12 = pnand %p1801_p11, %p1795_p13 }
  0x6c   : > { %1805 = shalt.err (!%p1802_p12)
}
  0x6d   : > { %s2035_s6 = smov [#allocation7]   ;;  %s2036_s16 = smov [#allocation14]  }
  0x6e   : > { %1565 = dma.vmem_to_smem (!%p2553_p1), %s348_s26, 16, %s2035_s6, [#allocation6]  }
  0x6f   : > { %s370_s12 = sshll.u32 %s2036_s16, 4  ;;  %s2037_s10 = smov [#allocation15]   ;;  %s371_s12 = int_to_ptr.vmem [resolvable:$true] %s370_s12 }
  0x70   : > { %s383_s22 = sshll.u32 %s2037_s10, 4  ;;  %s1817_s29 = scalar_lea.vmem %s371_s12, 2176  ;;  %s384_s22 = int_to_ptr.vmem [resolvable:$true] %s383_s22 }
  0x71   : > { %p1818_p3 = scmp.ne.s32.totalorder %s371_s12, %s1817_s29  ;;  %p2557_p2 = pmov %p2556_p7 }
  0x72   : > { %p1825_p7 = scmp.lt.s32.totalorder %s371_s12, %s371_s12  ;;  %p1826_p8 = scmp.lt.s32.totalorder %s1817_s29, %s1817_s29 }
  0x73   : > { %p1820_p9 = pnand %p1818_p3, %p2557_p2 }
  0x74   : > { %p1827_p13 = por %p1826_p8, %p1825_p7 }
  0x75   : > { %p1821_p4 = pneg %p1820_p9 }
  0x77   : > { %p1828_p0 = pnand %p1827_p13, %p1821_p4 }
  0x79   : > { %1831 = shalt.err (!%p1828_p0)
}
  0x7a   : > { %s2558_s7 = sld [smem:[#allocation38_spill]]  ;;  %s1843_s26 = scalar_lea.vmem %s384_s22, 2048 }
  0x7b   : > { %p1844_p10 = scmp.ne.s32.totalorder %s384_s22, %s1843_s26  ;;  %p2559_p11 = pmov %p2557_p2 }
  0x7c   : > { %p1851_p2 = scmp.lt.s32.totalorder %s384_s22, %s384_s22  ;;  %p1852_p9 = scmp.lt.s32.totalorder %s1843_s26, %s1843_s26 }
  0x7d   : > { %p1846_p12 = pnand %p1844_p10, %p2559_p11 }
  0x7e   : > { %p1853_p4 = por %p1852_p9, %p1851_p2 }
  0x7f   : > { %p1847_p3 = pneg %p1846_p12 }
  0x80   : > { %1571 = dma.hbm_to_vmem [thread:$0]  (!%p2553_p1), %s2558_s7, 2176, %s371_s12, [#allocation13], %s2552_s20, %s2552_s20, %s2551_s11  }
  0x81   : > { %p1854_p7 = pnand %p1853_p4, %p1847_p3 }
  0x83   : > { %1857 = shalt.err (!%p1854_p7)
}
  0x84   : > { %s2038_s6 = smov 64   ;;  %s2039_s16 = smov 4  }
  0x85   : > { %1574 = dma.hbm_to_vmem [thread:$0]  (!%p2553_p1), %s2504_s8, 2048, %s384_s22, [#allocation16], %s2038_s6, %s2038_s6, %s2039_s16  }
  0x86   : > { %s2283_s30 = scalar_lea.hbm %s2498_s2, %s2199_s14  ;;  %s404_s26 = scalar_lea.vmem [#allocation8], %s2196_s13 }
  0x87   : > { %s411_s0 = sshll.u32 %s404_s26, 4  ;;  %s2292_s25 = scalar_lea.hbm %s2500_s4, %s2199_s14  ;;  %s2286_s0 = int_to_ptr.vmem [resolvable:$true] %s411_s0 }
  0x88   : > { %s2560_s28 = sand.u32 1, %s2024_s19   ;;  %s1858_s22 = scalar_lea.hbm %s2283_s30, 256 }
  0x89   : > { %s401_s12 = scalar_lea.sflag [#allocation3], %s2560_s28  ;;  %p1859_p1 = scmp.ne.s32.totalorder %s2283_s30, %s1858_s22 }
  0x8a   : > { %s1863_s10 = scalar_lea.hbm %s2498_s2, 512  ;;  %p1864_p0 = scmp.lt.s32.totalorder %s2283_s30, %s2498_s2 }
  0x8b   : > { %p1861_p8 = pnand %p1859_p1, %p2221_p5  ;;  %p1865_p10 = scmp.lt.s32.totalorder %s1863_s10, %s1858_s22 }
  0x8d   : > { %p1862_p13 = pneg %p1861_p8  ;;  %p1866_p11 = por %p1865_p10, %p1864_p0 }
  0x8f   : > { %p1867_p12 = pnand %p1866_p11, %p1862_p13 }
  0x91   : > { %1870 = shalt.err (!%p1867_p12)
}
  0x92   : > { %s1871_s1 = scalar_lea.vmem %s2286_s0, 256  ;;  %s2040_s7 = smov [#allocation8]  }
  0x93   : > { %p1872_p3 = scmp.ne.s32.totalorder %s2286_s0, %s1871_s1  ;;  %s1876_s28 = sshll.u32 %s2040_s7, 4  ;;  %s1877_s28 = int_to_ptr.vmem [resolvable:$false] %s1876_s28 }
  0x94   : > { %s1878_s14 = scalar_lea.vmem %s1877_s28, 512  ;;  %p1879_p4 = scmp.lt.s32.totalorder %s2286_s0, %s1877_s28 }
  0x95   : > { %p1874_p2 = pnand %p1872_p3, %p2221_p5  ;;  %p1880_p7 = scmp.lt.s32.totalorder %s1878_s14, %s1871_s1 }
  0x97   : > { %p1875_p9 = pneg %p1874_p2  ;;  %p1881_p1 = por %p1880_p7, %p1879_p4 }
  0x99   : > { %p1882_p8 = pnand %p1881_p1, %p1875_p9 }
  0x9b   : > { %1885 = shalt.err (!%p1882_p8)
}
  0x9c   : > { %1578 = dma.hbm_to_vmem [thread:$0]  (!%p2201_p6), %s2283_s30, 256, %s2286_s0, %s401_s12, %s2552_s20, %s2552_s20, %s2551_s11  }
  0x9d   : > { %s446_s26 = scalar_lea.vmem [#allocation11], %s2196_s13  ;;  %s1886_s6 = scalar_lea.hbm %s2292_s25, 256 }
  0x9e   : > { %s453_s22 = sshll.u32 %s446_s26, 4  ;;  %p1887_p13 = scmp.ne.s32.totalorder %s2292_s25, %s1886_s6  ;;  %s454_s22 = int_to_ptr.vmem [resolvable:$true] %s453_s22 }
  0x9f   : > { %s1891_s29 = scalar_lea.hbm %s2500_s4, 512  ;;  %p1892_p11 = scmp.lt.s32.totalorder %s2292_s25, %s2500_s4 }
  0xa0   : > { %p1889_p0 = pnand %p1887_p13, %p2221_p5  ;;  %p1893_p12 = scmp.lt.s32.totalorder %s1891_s29, %s1886_s6 }
  0xa2   : > { %p1890_p10 = pneg %p1889_p0  ;;  %p1894_p3 = por %p1893_p12, %p1892_p11 }
  0xa4   : > { %p1895_p2 = pnand %p1894_p3, %p1890_p10 }
  0xa6   : > { %1898 = shalt.err (!%p1895_p2)
}
  0xa7   : > { %s1899_s0 = scalar_lea.vmem %s454_s22, 256  ;;  %s2041_s13 = smov [#allocation11]  }
  0xa8   : > { %p1900_p9 = scmp.ne.s32.totalorder %s454_s22, %s1899_s0  ;;  %s1904_s30 = sshll.u32 %s2041_s13, 4  ;;  %s1905_s30 = int_to_ptr.vmem [resolvable:$false] %s1904_s30 }
  0xa9   : > { %s1906_s12 = scalar_lea.vmem %s1905_s30, 512  ;;  %p1907_p1 = scmp.lt.s32.totalorder %s454_s22, %s1905_s30 }
  0xaa   : > { %p1902_p4 = pnand %p1900_p9, %p2221_p5  ;;  %p1908_p8 = scmp.lt.s32.totalorder %s1906_s12, %s1899_s0 }
  0xac   : > { %p1903_p7 = pneg %p1902_p4  ;;  %p1909_p13 = por %p1908_p8, %p1907_p1 }
  0xae   : > { %p1910_p0 = pnand %p1909_p13, %p1903_p7 }
  0xb0   : > { %1913 = shalt.err (!%p1910_p0)
}
  0xb1   : > { %1584 = dma.hbm_to_vmem [thread:$0]  (!%p2201_p6), %s2292_s25, 256, %s454_s22, %s2215_s27, %s2552_s20, %s2552_s20, %s2551_s11  }
  0xb2   : > { %p2561_p5 = scmp.ne.s32.totalorder %s2538_s24, 0 }
  0xb3   : > { %p2562_p10 = scmp.eq.s32.totalorder (!%p2561_p5), %s2129_s23, 0 }
  0xb4   : > { %472 = sbr.rel (%p2561_p5) target bundleno = 724 (0x2d4), region = 60 }
  0xb9   : > { %1983 = dma.done.wait (%p2562_p10), [#allocation5], 16   ;;  %p2563_p11 = pmov %p2562_p10 }
  0xba   : > { %p2564_p12 = pmov %p2562_p10 }
  0xbb   : > { %1985 = vsyncadd (%p2563_p11), [#allocation5], 4294967280 }
  0xbc   : > { %1987 = dma.done.wait (%p2564_p12), [#allocation6], 16   ;;  %p2565_p3 = pmov %p2562_p10 }
  0xbd   : > { %s2351_s17 = sand.u32 1, %s2020_s18   ;;  %p2566_p6 = scmp.ne.s32.totalorder %s2543_s21, 0 }
  0xbe   : > { %1989 = vsyncadd (%p2565_p3), [#allocation6], 4294967280  ;;  %s2354_s24 = sshll.u32 %s2351_s17, 4  ;;  %s483_s27 = scalar_lea.sflag [#allocation3], %s2351_s17 }
  0xbf   : > { %s486_s15 = scalar_lea.vmem [#allocation8], %s2354_s24 }
  0xc0   : > { %1991 = dma.done.wait (%p2566_p6), %s483_s27, 256  }
  0xc1   : > { %1993 = vsyncadd (%p2566_p6), %s483_s27, 4294967040  ;;  %s491_s11 = sand.u32 1, %s2129_s23   ;;  %s495_s25 = scalar_lea.vmem [#allocation9], %s2354_s24 }
  0xc2   : > { %s492_s20 = scalar_lea.sflag [#allocation10], %s491_s11 }
  0xc3   : > { %1995 = dma.done.wait (%p2566_p6), %s492_s20, 512  }
  0xc4   : > { %1997 = vsyncadd (%p2566_p6), %s492_s20, 4294966784  ;;  %s504_s7 = scalar_lea.vmem [#allocation11], %s2354_s24  ;;  %p2567_p2 = pmov %p2565_p3 }
  0xc6   : > { %1999 = dma.done.wait (%p2567_p2), [#allocation13], 4224   ;;  %p2568_p9 = pmov %p2567_p2 }
  0xc7   : > { %p2569_p4 = pmov %p2567_p2 }
  0xc8   : > { %2001 = vsyncadd (%p2568_p9), [#allocation13], 4294963072 }
  0xc9   : > { %2003 = dma.done.wait (%p2569_p4), [#allocation16], 2048   ;;  %p2570_p7 = pmov %p2567_p2 }
  0xcb   : > { %2005 = vsyncadd (%p2570_p7), [#allocation16], 4294965248 }
  0xcc   : > { %521 = sfence }
  0xcd   : > { %v1649_v0 = vld [vmem:[#allocation14 + $0x74] ss:$8 sps:$4 sm:$0xff]   ;;  %v2042_v2 = vmov 0   ;;  %v1653_v3 = vld [vmem:[#allocation14 + $0x70] ss:$8 sps:$4 sm:$0xff]   ;;  %s2378_s21 = sld [smem:[#allocation2 + %s2129_s23]] }
  0xce   : > { %v1651_v1 = vld [vmem:[#allocation12 + $0x74] ss:$8 sps:$4 sm:$0xff]   ;;  %900 = vmatprep.mubr.bf16.mxu1 %v2042_v2  ;;  %745 = vmatprep.subr.bf16.mxu0 %v1649_v0  ;;  %v1654_v4 = vld [vmem:[#allocation12 + $0x70] ss:$8 sps:$4 sm:$0xff]   ;;  %v1655_v5 = vld [vmem:[#allocation14 + $0x64] ss:$8 sps:$4 sm:$0xff]  }
  0xcf   : > { %868 = vmatprep.subr.bf16.mxu1 %v1651_v1  ;;  %746 = vmatpush1.bf16.msra.mxu0 %v1653_v3  ;;  %v1657_v6 = vld [vmem:[#allocation12 + $0x64] ss:$8 sps:$4 sm:$0xff]   ;;  %v1659_v7 = vld [vmem:[#allocation14 + $0x60] ss:$8 sps:$4 sm:$0xff]   ;;  %v1661_v9 = vld [vmem:[#allocation14 + $0x54] ss:$8 sps:$4 sm:$0xff]  }
  0xd0   : > { %869 = vmatpush1.bf16.msra.mxu1 %v1654_v4  ;;  %747 = vmatprep.subr.bf16.mxu0 %v1655_v5  ;;  %v1660_v8 = vld [vmem:[#allocation12 + $0x60] ss:$8 sps:$4 sm:$0xff]   ;;  %v1663_v10 = vld [vmem:[#allocation12 + $0x54] ss:$8 sps:$4 sm:$0xff]   ;;  %v1665_v11 = vld [vmem:[#allocation14 + $0x50] ss:$8 sps:$4 sm:$0xff]  }
  0xd1   : > { %870 = vmatprep.subr.bf16.mxu1 %v1657_v6  ;;  %v1666_v12 = vld [vmem:[#allocation12 + $0x50] ss:$8 sps:$4 sm:$0xff]   ;;  %v1667_v13 = vld [vmem:[#allocation14 + $0x44] ss:$8 sps:$4 sm:$0xff]   ;;  %v1671_v15 = vld [vmem:[#allocation14 + $0x40] ss:$8 sps:$4 sm:$0xff]  }
  0xd2   : > { %v1669_v14 = vld [vmem:[#allocation12 + $0x44] ss:$8 sps:$4 sm:$0xff]   ;;  %v1672_v16 = vld [vmem:[#allocation12 + $0x40] ss:$8 sps:$4 sm:$0xff]   ;;  %v1673_v17 = vld [vmem:[#allocation14 + $0x34] ss:$8 sps:$4 sm:$0xff]  }
  0xd3   : > { %748 = vmatpush1.bf16.msra.mxu0 %v1659_v7  ;;  %v1675_v18 = vld [vmem:[#allocation12 + $0x34] ss:$8 sps:$4 sm:$0xff]   ;;  %v1677_v19 = vld [vmem:[#allocation14 + $0x30] ss:$8 sps:$4 sm:$0xff]   ;;  %v1679_v21 = vld [vmem:[#allocation14 + $0x24] ss:$8 sps:$4 sm:$0xff]   ;;  %v597_v47 = vstv %s2378_s21 }
  0xd4   : > { %871 = vmatpush1.bf16.msra.mxu1 %v1660_v8  ;;  %749 = vmatprep.subr.bf16.mxu0 %v1661_v9  ;;  %v1678_v20 = vld [vmem:[#allocation12 + $0x30] ss:$8 sps:$4 sm:$0xff]   ;;  %v1681_v22 = vld [vmem:[#allocation12 + $0x24] ss:$8 sps:$4 sm:$0xff]   ;;  %v1683_v23 = vld [vmem:[#allocation14 + $0x20] ss:$8 sps:$4 sm:$0xff]  }
  0xd5   : > { %872 = vmatprep.subr.bf16.mxu1 %v1663_v10  ;;  %v1684_v24 = vld [vmem:[#allocation12 + $0x20] ss:$8 sps:$4 sm:$0xff]   ;;  %v1685_v25 = vld [vmem:[#allocation14 + $0x14] ss:$8 sps:$4 sm:$0xff]   ;;  %s593_s28 = ssub.f32 1.0, %s2378_s21  ;;  %vm734_vm0 = vcmask 15360  }
  0xd6   : > { %v1687_v26 = vld [vmem:[#allocation12 + $0x14] ss:$8 sps:$4 sm:$0xff]   ;;  %v1689_v28 = vld [vmem:[#allocation14 + $0x10] ss:$8 sps:$4 sm:$0xff]   ;;  %v639_v30 = vld [vmem:[#allocation14 + $0x80] sm:$0x11] }
  0xd7   : > { %750 = vmatpush1.bf16.msra.mxu0 %v1665_v11  ;;  %v580_v27 = vld [vmem:[%s486_s15] sm:$0xff]  ;;  %v581_v31 = vld [vmem:[%s486_s15 + $0x8] sm:$0xff]  ;;  %vm738_vm1 = vcmask 1040384   ;;  %v594_v40 = vstv %s593_s28  ;;  %v1458_v41 = vcombine.low %v639_v30, %v639_v30  ;;  %v1459_v50 = vcombine.high %v639_v30, %v639_v30  ;;  %p574_p1 = scmp.lt.s32.totalorder %s2129_s23, 1  ;;  %s1146_s10 = sld [smem:[#allocation7 + %s2129_s23]] }
  0xd8   : > { %873 = vmatpush1.bf16.msra.mxu1 %v1666_v12  ;;  %751 = vmatprep.subr.bf16.mxu0 %v1667_v13  ;;  %v1690_v29 = vld [vmem:[#allocation12 + $0x10] ss:$8 sps:$4 sm:$0xff]   ;;  %v1436_v32 = vadd.f32 12.0, %v580_v27  ;;  %v1691_v33 = vld [vmem:[#allocation14 + $0x4] ss:$8 sps:$4 sm:$0xff]   ;;  %v1437_v35 = vadd.f32 12.0, %v581_v31  ;;  %v913_v12 = vlaneseq }
  0xd9   : > { %874 = vmatprep.subr.bf16.mxu1 %v1669_v14  ;;  %v1693_v34 = vld [vmem:[#allocation12 + $0x4] ss:$8 sps:$4 sm:$0xff]   ;;  %v1695_v42 = vld [vmem:[#allocation14] ss:$8 sps:$4 sm:$0xff]   ;;  %v740_v53 = vsel %vm738_vm1, %v1458_v41, 0  ;;  %v1704_v62 = vld [vmem:[#allocation15 + $0x70] sm:$0xff]  }
  0xda   : > { %v2387_v36 = vld [vmem:[%s495_s25] sm:$0xff]  ;;  %v587_v37 = vmul.f32 0.071428575, %v1436_v32  ;;  %v588_v39 = vmul.f32 0.071428575, %v1437_v35  ;;  %v2393_v44 = vld [vmem:[%s495_s25 + $0x8] sm:$0xff] }
  0xdb   : > { %752 = vmatpush1.bf16.msra.mxu0 %v1671_v15  ;;  %v1701_v38 = vld [vmem:[%s504_s7 + $0x4] ss:$8 sps:$4 sm:$0xff]   ;;  %v1696_v43 = vld [vmem:[#allocation12] ss:$8 sps:$4 sm:$0xff]   ;;  %v595_v49 = vmul.f32 %v594_v40, %v2387_v36  ;;  %v596_v52 = vmul.f32 %v594_v40, %v2393_v44  ;;  %s575_s14 = scalar_select %p574_p1, %s2129_s23, 1  ;;  %v2411_v13 = vshrl.u32 %v913_v12, 7 }
  0xdc   : > { %875 = vmatpush1.bf16.msra.mxu1 %v1672_v16  ;;  %753 = vmatprep.subr.bf16.mxu0 %v1673_v17  ;;  %v589_v45 = vmul.f32 2.0, %v587_v37  ;;  %v590_v46 = vmul.f32 2.0, %v588_v39  ;;  %v1699_v58 = vld [vmem:[%s504_s7] ss:$8 sps:$4 sm:$0xff]   ;;  %s567_s1 = scalar_lea.vmem [#allocation17], %s2354_s24  ;;  %s1506_s13 = sshll.u32 %s2129_s23, 8 }
  0xdd   : > { %876 = vmatprep.subr.bf16.mxu1 %v1675_v18  ;;  %1461 = vmatprep.mubr.msk.bf16.mxu0 %vm734_vm0, %v1701_v38  ;;  %v1702_v60 = vld [vmem:[#allocation15 + $0x78] sm:$0xff]   ;;  %v1705_v63 = vld [vmem:[#allocation15 + $0x30] sm:$0xff]   ;;  %v1706_v0 = vld [vmem:[#allocation15 + $0x68] sm:$0xff]   ;;  %s1435_s26 = sshll.u32 %s575_s14, 1  ;;  %v915_v14 = vsub.s32 0, %v2411_v13  ;;  %v919_v16 = vsub.s32 1, %v2411_v13 }
  0xde   : > { %v2397_v48 = vadd.f32 -1.0, %v589_v45  ;;  %v2400_v51 = vadd.f32 -1.0, %v590_v46  ;;  %v1703_v61 = vld [vmem:[#allocation15 + $0x38] sm:$0xff]   ;;  %v1707_v1 = vld [vmem:[#allocation15 + $0x28] sm:$0xff]   ;;  %v1708_v2 = vld [vmem:[#allocation15 + $0x60] sm:$0xff]   ;;  %s577_s16 = scalar_lea.vmem %s2501_s5, %s1435_s26  ;;  %s1186_s0 = sshll.u32 %s567_s1, 4  ;;  %s2427_s0 = int_to_ptr.vmem [resolvable:$true] %s1186_s0 }
  0xdf   : > { %754 = vmatpush1.bf16.msra.mxu0 %v1677_v19  ;;  %v1709_v3 = vld [vmem:[#allocation15 + $0x20] sm:$0xff]   ;;  %v1710_v4 = vld [vmem:[#allocation15 + $0x58] sm:$0xff]   ;;  %v1712_v6 = vld [vmem:[#allocation15 + $0x50] sm:$0xff]   ;;  %s2571_s30 = sld [smem:[#allocation32_spill]]  ;;  %s1169_s11 = scalar_lea.sflag [#allocation4], %s2351_s17 }
  0xe0   : > { %877 = vmatpush1.bf16.msra.mxu1 %v1678_v20  ;;  %755 = vmatprep.subr.bf16.mxu0 %v1679_v21  ;;  %v598_v54 = vmul.f32 %v2397_v48, %v597_v47  ;;  %v599_v55 = vmul.f32 %v2400_v51, %v597_v47  ;;  %v1711_v5 = vld [vmem:[#allocation15 + $0x18] sm:$0xff]   ;;  %v1713_v7 = vld [vmem:[#allocation15 + $0x10] sm:$0xff]   ;;  %v1714_v8 = vld [vmem:[#allocation15 + $0x48] sm:$0xff]   ;;  %s2572_s27 = sld [smem:[#allocation39_spill]]  ;;  %s1914_s20 = scalar_lea.vmem %s2427_s0, 256 }
  0xe1   : > { %878 = vmatprep.subr.bf16.mxu1 %v1681_v22  ;;  %v1715_v9 = vld [vmem:[#allocation15 + $0x8] sm:$0xff]   ;;  %v1716_v10 = vld [vmem:[#allocation15 + $0x40] sm:$0xff]   ;;  %v911_v15 = vld [vmem:[%s577_s16] sm:$0x3]  ;;  %p1915_p8 = scmp.ne.s32.totalorder %s2427_s0, %s1914_s20  ;;  %s2044_s25 = smov [#allocation17]  }
  0xe2   : > { %v600_v56 = vadd.f32 %v598_v54, %v595_v49  ;;  %v601_v57 = vadd.f32 %v599_v55, %v596_v52  ;;  %v1717_v11 = vld [vmem:[#allocation15] sm:$0xff]   ;;  %v916_v18 = vrot.slane %v911_v15, %v915_v14  ;;  %v920_v22 = vrot.slane %v911_v15, %v919_v16  ;;  %v1478_v15 = vld [vmem:[%s2505_s9] ss:$0 sm:$0xff]  ;;  %s1918_s7 = sshll.u32 %s2044_s25, 4  ;;  %s1919_s7 = int_to_ptr.vmem [resolvable:$false] %s1918_s7 }
  0xe3   : > { %756 = vmatpush1.bf16.msra.mxu0 %v1683_v23  ;;  %s1920_s21 = scalar_lea.vmem %s1919_s7, 512  ;;  %p1921_p10 = scmp.lt.s32.totalorder %s2427_s0, %s1919_s7 }
  0xe4   : > { %879 = vmatpush1.bf16.msra.mxu1 %v1684_v24  ;;  %757 = vmatprep.subr.bf16.mxu0 %v1685_v25  ;;  %v604_v59 = vpack.c.bf16 %v601_v57, %v600_v56  ;;  %p1922_p11 = scmp.lt.s32.totalorder %s1920_s21, %s1914_s20 }
  0xe5   : > { %880 = vmatprep.subr.bf16.mxu1 %v1687_v26  ;;  %p2573_p13 = scmp.ne.s32.totalorder %s2571_s30, 0 }
  0xe6   : > { %s2434_s15 = scalar_lea.hbm %s2572_s27, %s1506_s13  ;;  %p1923_p12 = por %p1922_p11, %p1921_p10 }
  0xe7   : > { %758 = vmatpush1.bf16.msra.mxu0 %v1689_v28  ;;  %p1916_p0 = pnand %p1915_p8, %p2573_p13 }
  0xe8   : > { %881 = vmatpush1.bf16.msra.mxu1 %v1690_v29  ;;  %759 = vmatprep.subr.bf16.mxu0 %v1691_v33 }
  0xe9   : > { %882 = vmatprep.subr.bf16.mxu1 %v1693_v34  ;;  %p1917_p5 = pneg %p1916_p0 }
  0xeb   : > { %760 = vmatpush1.bf16.msra.mxu0 %v1695_v42  ;;  %p1924_p3 = pnand %p1923_p12, %p1917_p5 }
  0xec   : > { %883 = vmatpush1.bf16.msra.mxu1 %v1696_v43  ;;  %1460 = vmatprep.subr.msk.bf16.mxu0 %vm738_vm1, %v1459_v50 }
  0xed   : > { %1507 = vmatprep.subr.bf16.mxu1 %v1702_v60 }
  0xef   : > { %776 = vmatpush2.bf16.msra.mxu0 %v740_v53  ;;  %901 = vmatmul.mubr.bf16.vlgmr.msra.gmra.mxu1 %v604_v59 }
  0xf0   : > { %1508 = vmatpush3.bf16.msra.mxu1 %v1703_v61 }
  0xf1   : > { %1509 = vmatprep.subr.bf16.mxu1 %v1704_v62 }
  0xf2   : > { %778 = vmatmul.mubr.bf16.vlgmr.msra.gmra.mxu0 %v1699_v58 }
  0xf4   : > { %1510 = vmatpush3.bf16.msra.mxu1 %v1705_v63 }
  0xf5   : > { %1511 = vmatprep.subr.bf16.mxu1 %v1706_v0 }
  0xf8   : > { %1512 = vmatpush3.bf16.msra.mxu1 %v1707_v1 }
  0xf9   : > { %1513 = vmatprep.subr.bf16.mxu1 %v1708_v2 }
  0xfc   : > { %1514 = vmatpush3.bf16.msra.mxu1 %v1709_v3 }
  0xfd   : > { %1515 = vmatprep.subr.bf16.mxu1 %v1710_v4 }
 0x100   : > { %1516 = vmatpush3.bf16.msra.mxu1 %v1711_v5 }
 0x101   : > { %1517 = vmatprep.subr.bf16.mxu1 %v1712_v6 }
 0x104   : > { %1518 = vmatpush3.bf16.msra.mxu1 %v1713_v7 }
 0x105   : > { %1519 = vmatprep.subr.bf16.mxu1 %v1714_v8 }
 0x108   : > { %1520 = vmatpush3.bf16.msra.mxu1 %v1715_v9 }
 0x109   : > { %1521 = vmatprep.subr.bf16.mxu1 %v1716_v10 }
 0x10c   : > { %1522 = vmatpush3.bf16.msra.mxu1 %v1717_v11 }
 0x1af   : > { %v902_v17 = vpop.f32.mrf.mxu1 }
 0x1b1   : > { %v904_v19 = vpop.f32.mrf.mxu1 }
 0x1b2   : > { %v779_v20 = vpop.f32.mrf.mxu0 }
 0x1b3   : > { %v903_v21 = vadd.f32 %v902_v17, %v779_v20  ;;  %v906_v23 = vpop.f32.mrf.mxu1  ;;  %v602_v17 = vsub.f32 %v2397_v48, %v2387_v36  ;;  %v603_v36 = vsub.f32 %v2400_v51, %v2393_v44 }
 0x1b4   : > { %v781_v24 = vpop.f32.mrf.mxu0 }
 0x1b5   : > { %v923_v25 = vadd.f32 %v916_v18, %v903_v21  ;;  %v905_v26 = vadd.f32 %v904_v19, %v781_v24  ;;  %v908_v31 = vpop.f32.mrf.mxu1  ;;  %v1145_v21 = vadd.s32 8, %v2411_v13 }
 0x1b6   : > { %v783_v27 = vpop.f32.mrf.mxu0 }
 0x1b7   : > { %v927_v28 = vmul.f32 %v923_v25, %v923_v25  ;;  %v924_v29 = vadd.f32 %v920_v22, %v905_v26  ;;  %v907_v30 = vadd.f32 %v906_v23, %v783_v27 }
 0x1b8   : > { %v785_v32 = vpop.f32.mrf.mxu0 }
 0x1b9   : > { %v931_v33 = vmul.f32 %v927_v28, %v923_v25  ;;  %v928_v34 = vmul.f32 %v924_v29, %v924_v29  ;;  %v925_v35 = vadd.f32 %v916_v18, %v907_v30  ;;  %v909_v37 = vadd.f32 %v908_v31, %v785_v32 }
 0x1ba   : > { %v2043_v28 = vmov 0.0  }
 0x1bb   : > { %v935_v38 = vmul.f32 0.044715, %v931_v33  ;;  %v932_v39 = vmul.f32 %v928_v34, %v924_v29  ;;  %v929_v40 = vmul.f32 %v925_v35, %v925_v35  ;;  %v926_v41 = vadd.f32 %v920_v22, %v909_v37 }
 0x1bc   : > { %v1147_v22 = vstv %s1146_s10 }
 0x1bd   : > { %v939_v42 = vadd.f32 %v935_v38, %v923_v25  ;;  %v936_v43 = vmul.f32 0.044715, %v932_v39  ;;  %v933_v45 = vmul.f32 %v929_v40, %v925_v35  ;;  %v930_v46 = vmul.f32 %v926_v41, %v926_v41 }
 0x1be   : > { %vm1148_vm2 = vcmp.lt.s32.totalorder %v2411_v13, %v1147_v22  ;;  %vm1149_vm3 = vcmp.lt.s32.totalorder %v1145_v21, %v1147_v22 }
 0x1bf   : > { %v943_v47 = vmul.f32 0.7978846, %v939_v42  ;;  %v940_v49 = vadd.f32 %v936_v43, %v924_v29  ;;  %v937_v50 = vmul.f32 0.044715, %v933_v45  ;;  %v934_v52 = vmul.f32 %v930_v46, %v926_v41 }
 0x1c0   : > { %v1496_v30 = vsel %vm1149_vm3, 1.0, %v2043_v28 }
 0x1c1   : > { %v944_v53 = vmul.f32 0.7978846, %v940_v49  ;;  %v941_v54 = vadd.f32 %v937_v50, %v925_v35  ;;  %v938_v55 = vmul.f32 0.044715, %v934_v52  ;;  %1718 = vtanh.f32 %v943_v47 }
 0x1c3   : > { %1720 = vtanh.f32 %v944_v53  ;;  %v945_v56 = vmul.f32 0.7978846, %v941_v54  ;;  %v942_v57 = vadd.f32 %v938_v55, %v926_v41 }
 0x1c5   : > { %1722 = vtanh.f32 %v945_v56  ;;  %v946_v58 = vmul.f32 0.7978846, %v942_v57 }
 0x1c7   : > { %1724 = vtanh.f32 %v946_v58 }
 0x1ce   : > { %v1719_v59 = vpop.eup %1718 }
 0x1cf   : > { %v951_v63 = vadd.f32 1.0, %v1719_v59 }
 0x1d0   : > { %v1721_v60 = vpop.eup %1720 }
 0x1d1   : > { %v952_v61 = vadd.f32 1.0, %v1721_v60  ;;  %v955_v5 = vmul.f32 0.5, %v951_v63 }
 0x1d2   : > { %v1723_v62 = vpop.eup %1722 }
 0x1d3   : > { %v953_v0 = vadd.f32 1.0, %v1723_v62  ;;  %v956_v3 = vmul.f32 0.5, %v952_v61  ;;  %v959_v10 = vmul.f32 %v955_v5, %v923_v25 }
 0x1d4   : > { %v1725_v1 = vpop.eup %1724 }
 0x1d5   : > { %v954_v2 = vadd.f32 1.0, %v1725_v1  ;;  %v957_v4 = vmul.f32 0.5, %v953_v0  ;;  %v960_v8 = vmul.f32 %v956_v3, %v924_v29  ;;  %v1495_v29 = vsel %vm1148_vm2, 1.0, %v2043_v28 }
 0x1d7   : > { %v958_v6 = vmul.f32 0.5, %v954_v2  ;;  %v961_v7 = vmul.f32 %v957_v4, %v925_v35 }
 0x1d9   : > { %v962_v9 = vmul.f32 %v958_v6, %v926_v41  ;;  %v963_v12 = vpack.c.bf16 %v961_v7, %v959_v10 }
 0x1db   : > { %v964_v11 = vpack.c.bf16 %v962_v9, %v960_v8 }
 0x1dd   : > { %1132 = vmatprep.mubr.bf16.mxu1 %v964_v11 }
 0x1de   : > { %1133 = vmatmul.mubr.bf16.vlgmr.msra.gmra.mxu1 %v963_v12 }
 0x29e   : > { %v1523_v14 = vpop.f32.mrf.mxu1 }
 0x2a0   : > { %v1524_v16 = vpop.f32.mrf.mxu1 }
 0x2a1   : > { %v1525_v18 = vadd.f32 %v1524_v16, %v1523_v14 }
 0x2a2   : > { %v1526_v19 = vpop.f32.mrf.mxu1 }
 0x2a3   : > { %v1135_v20 = vadd.f32 %v1525_v18, %v1478_v15 }
 0x2a4   : > { %v1527_v23 = vpop.f32.mrf.mxu1 }
 0x2a5   : > { %1141 = vst [vmem:[%s567_s1] sm:$0xff] %v1135_v20  ;;  %v1154_v24 = vsub.f32 %v1135_v20, %v602_v17  ;;  %v1528_v48 = vadd.f32 %v1527_v23, %v1526_v19 }
 0x2a7   : > { %v1138_v25 = vadd.f32 %v1528_v48, %v1478_v15  ;;  %v1156_v26 = vmul.f32 %v1154_v24, %v1154_v24 }
 0x2a9   : > { %1142 = vst [vmem:[%s567_s1 + $0x8] sm:$0xff] %v1138_v25  ;;  %v1155_v27 = vsub.f32 %v1138_v25, %v603_v36 }
 0x2aa   : > { %1927 = shalt.err (!%p1924_p3)
}
 0x2ab   : > { %s1928_s28 = scalar_lea.hbm %s2434_s15, 256  ;;  %s1932_s22 = scalar_lea.hbm %s2572_s27, 512 }
 0x2ac   : > { %p1929_p6 = scmp.ne.s32.totalorder %s2434_s15, %s1928_s28  ;;  %p1933_p4 = scmp.lt.s32.totalorder %s2434_s15, %s2572_s27 }
 0x2ad   : > { %p1934_p7 = scmp.lt.s32.totalorder %s1932_s22, %s1928_s28 }
 0x2ae   : > { %p1930_p2 = pnand %p1929_p6, %p2573_p13 }
 0x2af   : > { %p1935_p1 = por %p1934_p7, %p1933_p4 }
 0x2b0   : > { %p1931_p9 = pneg %p1930_p2 }
 0x2b2   : > { %p1936_p8 = pnand %p1935_p1, %p1931_p9 }
 0x2b4   : > { %1939 = shalt.err (!%p1936_p8)
}
 0x2b5   : > { %s2045_s10 = smov 128   ;;  %s2046_s29 = smov 8   ;;  %v1157_v44 = vmul.f32 %v1155_v27, %v1155_v27  ;;  %v1158_v51 = vmul.f32 %v1495_v29, %v1156_v26 }
 0x2b6   : > { %1555 = dma.vmem_to_hbm [thread:$0]  (%p2573_p13), %s2427_s0, 256, %s2434_s15, %s1169_s11, %s2045_s10, %s2045_s10, %s2046_s29  }
 0x2b7   : > { %v1159_v13 = vmul.f32 %v1496_v30, %v1157_v44  ;;  %s1500_s3 = sshll.u32 %s2129_s23, 4  ;;  %s573_s1 = scalar_lea.vmem [#allocation18], %s2351_s17 }
 0x2b8   : > { %s1202_s13 = sshll.u32 %s573_s1, 4  ;;  %s2574_s20 = sld [smem:[#allocation40_spill]]  ;;  %s1203_s13 = int_to_ptr.vmem [resolvable:$true] %s1202_s13 }
 0x2b9   : > { %v1160_v31 = vadd.f32 %v1159_v13, %v1158_v51  ;;  %s1174_s0 = scalar_lea.sflag [#allocation19], %s2351_s17  ;;  %s1940_s15 = scalar_lea.vmem %s1203_s13, 16 }
 0x2ba   : > { %p1941_p0 = scmp.ne.s32.totalorder %s1203_s13, %s1940_s15  ;;  %s2047_s11 = smov [#allocation18]  }
 0x2bb   : > { %v1161_v32 = vrot.slane %v1160_v31, 4  ;;  %s1944_s21 = sshll.u32 %s2047_s11, 4  ;;  %s1945_s21 = int_to_ptr.vmem [resolvable:$false] %s1944_s21 }
 0x2bc   : > { %p1942_p5 = pnand %p1941_p0, %p2573_p13  ;;  %s1946_s23 = scalar_lea.vmem %s1945_s21, 32 }
 0x2bd   : > { %v1162_v33 = vadd.f32 %v1161_v32, %v1160_v31  ;;  %p1947_p11 = scmp.lt.s32.totalorder %s1203_s13, %s1945_s21  ;;  %p1948_p12 = scmp.lt.s32.totalorder %s1946_s23, %s1940_s15 }
 0x2be   : > { %s2575_s25 = smov %s2574_s20  ;;  %s1200_s7 = scalar_lea.hbm %s2574_s20, %s1500_s3 }
 0x2bf   : > { %v1163_v34 = vrot.slane %v1162_v33, 2  ;;  %p1943_p10 = pneg %p1942_p5  ;;  %p1949_p3 = por %p1948_p12, %p1947_p11 }
 0x2c1   : > { %v1164_v35 = vadd.f32 %v1163_v34, %v1162_v33  ;;  %p1950_p6 = pnand %p1949_p3, %p1943_p10 }
 0x2c3   : > { %v1165_v37 = vrot.slane %v1164_v35, 1 }
 0x2c5   : > { %v1166_v38 = vadd.f32 %v1165_v37, %v1164_v35 }
 0x2c7   : > { %1167 = vst [vmem:[%s573_s1] sm:$0x1] %v1166_v38 }
 0x2c8   : > { %1953 = shalt.err (!%p1950_p6)
}
 0x2c9   : > { %s1954_s28 = scalar_lea.hbm %s1200_s7, 16  ;;  %s1958_s26 = scalar_lea.hbm %s2575_s25, 32 }
 0x2ca   : > { %p1955_p2 = scmp.ne.s32.totalorder %s1200_s7, %s1954_s28  ;;  %p1959_p7 = scmp.lt.s32.totalorder %s1200_s7, %s2575_s25 }
 0x2cb   : > { %p1960_p1 = scmp.lt.s32.totalorder %s1958_s26, %s1954_s28 }
 0x2cc   : > { %p1956_p9 = pnand %p1955_p2, %p2573_p13 }
 0x2cd   : > { %p1961_p8 = por %p1960_p1, %p1959_p7 }
 0x2ce   : > { %p1957_p4 = pneg %p1956_p9 }
 0x2d0   : > { %p1962_p0 = pnand %p1961_p8, %p1957_p4 }
 0x2d2   : > { %1965 = shalt.err (!%p1962_p0)
}
 0x2d3   : > { %1556 = dma.vmem_to_hbm [thread:$0]  (%p2573_p13), %s1203_s13, 16, %s1200_s7, %s1174_s0  }
 0x2d4 PF: > { %s2576_s16 = sld [smem:[#allocation28_spill]] }
 0x2d5   : > { %s2577_s10 = sld [smem:[#allocation33_spill]] }
 0x2d6   : > { %s2578_s29 = sld [smem:[#allocation29_spill]] }
 0x2da   : > { %s1214_s3 = sand.u32 1, %s2576_s16  }
 0x2db   : > { %p2579_p5 = scmp.ne.s32.totalorder %s2577_s10, 0  ;;  %s1215_s1 = scalar_lea.sflag [#allocation4], %s1214_s3 }
 0x2dc   : > { %p2580_p10 = scmp.ge.s32.totalorder %s2578_s29, 2 }
 0x2de   : > { %p1586_p11 = pnand %p2580_p10, %p2579_p5 }
 0x2e0   : > { %p1587_p12 = pneg %p1586_p11 }
 0x2e2   : > { %2007 = dma.done.wait (%p1587_p12), %s1215_s1, 256  }
 0x2e3   : > { %2009 = vsyncadd (%p1587_p12), %s1215_s1, 4294967040  ;;  %s1224_s12 = scalar_lea.sflag [#allocation19], %s1214_s3 }
 0x2e4   : > { %2011 = dma.done.wait (%p1587_p12), %s1224_s12, 16  }
 0x2e5   : > { %2013 = vsyncadd (%p1587_p12), %s1224_s12, 4294967280  ;;  %s2581_s20 = sld [smem:[#allocation30_spill]]  ;;  %s2583_s17 = smov %s2020_s18 }
 0x2e6   : > { %s2582_s30 = sld [smem:[#allocation31_spill]]  ;;  %s2584_s18 = smov %s2024_s19 }
 0x2eb   : > { %p35_p13 = scmp.ge.s32.totalorder %s2581_s20, 4  }
 0x2ec   : > { %s2585_s19 = smov %s2582_s30 }
 0x2ed   :  { %37 = sbr.rel (!%p35_p13) target bundleno = 21 (0x15), region = 171 }
 0x2f2   :  { %1228 = vsyncpa [#allocation3], 1 }
 0x2f3   :  { %1230 = vsyncpa [#allocation3 + $0x1], 1 }
 0x2f4   :  { %1231 = vsyncpa [#allocation10], 1 }
 0x2f5   :  { %1233 = vsyncpa [#allocation10 + $0x1], 1 }
 0x2f6   :  { %1234 = vsyncpa [#allocation13], 1 }
 0x2f7   :  { %1235 = vsyncpa [#allocation16], 1 }
 0x2f8   :  { %1236 = vsyncpa [#allocation4], 1 }
 0x2f9   :  { %1238 = vsyncpa [#allocation4 + $0x1], 1 }
 0x2fa   :  { %1239 = vsyncpa [#allocation19], 1 }
 0x2fb   :  { %1241 = vsyncpa [#allocation19 + $0x1], 1 }
 0x2fc   :  { %1242 = vsyncpa [#allocation5], 1 }
 0x2fd   :  { %1244 = vsyncpa [#allocation5 + $0x1], 1 }
 0x2fe   :  { %1245 = vsyncpa [#allocation6], 1 }
 0x2ff   :  { %1247 = vsyncpa [#allocation6 + $0x1], 1 }

</bundles_post_ra>
